<compile_context>
chip_gen: v6e
topology: v6e:2x2x1
jax: 0.10.0
libtpu: 0.0.40
codegen_flags: <defaults>
</compile_context>

<pallas_src>
import functools

import jax
import jax.numpy as jnp
from jax.experimental import pallas as pl
from jax.experimental.pallas import tpu as pltpu


def _conv3x3_leaky_kernel(x_ref, w_ref, b_ref, o_ref, *, wp, m, negative_slope):
    # x_ref: (1, Cin, L)      flat zero-padded activation for one image,
    #                         L = Hp*Wp + 2 (1-element guard on each end)
    # w_ref: (9, Cout, Cin)   one (Cout, Cin) tap per (dy, dx)
    # b_ref: (Cout, 1)        f32 bias
    # o_ref: (1, Cout, M)     M = H * Wp  (lane-dense output slab)
    cout = o_ref.shape[1]

    # Bias folded into the accumulator init (saves one full-accumulator VPU add).
    acc = jnp.broadcast_to(b_ref[...], (cout, m)).astype(jnp.float32)

    x = x_ref[0]                                   # (Cin, L), a few KB
    # 3x3 conv as 9 constant-lane-shift windows of the same flat buffer,
    # each feeding one (Cout, Cin) x (Cin, M) MXU matmul with f32 accumulation.
    for dy in range(3):
        for dx in range(3):
            start = dy * wp + dx                   # static lane offset
            xs = x[:, start:start + m]             # (Cin, M) shifted window
            acc = acc + jnp.dot(
                w_ref[dy * 3 + dx], xs, preferred_element_type=jnp.float32
            )

    # LeakyReLU epilogue in f32 (cheap on all generations, incl. v5e).
    acc = jnp.where(acc >= 0, acc, negative_slope * acc)
    o_ref[0] = acc.astype(o_ref.dtype)


def conv_forward(x_nchw, w_oihw, bias, *, compute_dtype=None, negative_slope=0.1):
    """Conv(kernel=3, padding=1) + LeakyReLU(0.1). Input/output are NCHW.

    compute_dtype: optional dtype (e.g. jnp.bfloat16) used to feed the MXU;
    accumulation, bias and activation stay in float32. Output keeps x's dtype.
    """
    N, Cin, H, W = x_nchw.shape
    Cout = w_oihw.shape[0]
    Hp, Wp = H + 2, W + 2
    M = H * Wp            # lane-dense slab width: H rows at padded width Wp
    L = Hp * Wp + 2       # flat padded length + 1-element guard on each side

    cdt = x_nchw.dtype if compute_dtype is None else compute_dtype

    # Zero-pad spatially (the conv's padding=1), flatten (Hp, Wp) -> Hp*Wp (free,
    # contiguous), then add a 1-element guard so all 9 tap windows are in-bounds.
    xp = jnp.pad(x_nchw, ((0, 0), (0, 0), (1, 1), (1, 1)))
    x_flat = jnp.pad(xp.reshape(N, Cin, Hp * Wp), ((0, 0), (0, 0), (1, 1)))
    x_flat = x_flat.astype(cdt)

    # OIHW -> (9, Cout, Cin): tap t = dy*3+dx holds w[:, :, dy, dx].
    w_taps = jnp.transpose(w_oihw, (2, 3, 0, 1)).reshape(9, Cout, Cin).astype(cdt)
    b2 = bias.reshape(Cout, 1).astype(jnp.float32)

    kernel = functools.partial(
        _conv3x3_leaky_kernel, wp=Wp, m=M, negative_slope=negative_slope
    )

    out_flat = pl.pallas_call(
        kernel,
        out_shape=jax.ShapeDtypeStruct((N, Cout, M), x_nchw.dtype),
        grid_spec=pltpu.PrefetchScalarGridSpec(
            num_scalar_prefetch=0,
            grid=(N,),
            in_specs=[
                pl.BlockSpec((1, Cin, L), lambda n: (n, 0, 0)),
                pl.BlockSpec((9, Cout, Cin), lambda n: (0, 0, 0)),
                pl.BlockSpec((Cout, 1), lambda n: (0, 0)),
            ],
            out_specs=pl.BlockSpec((1, Cout, M), lambda n: (n, 0, 0)),
        ),
        compiler_params=pltpu.CompilerParams(
            dimension_semantics=("parallel",),   # batch across TCs on v7x
            vmem_limit_bytes=32 * 1024 * 1024,
        ),
    )(x_flat, w_taps, b2)

    # (N, Cout, H*Wp) -> (N, Cout, H, Wp), drop the W-padding columns -> NCHW.
    out = out_flat.reshape(N, Cout, H, Wp)[:, :, :, 1:W + 1]
    return out


if __name__ == "__main__":
    # Shapes consistent with Conv(in_channels=4, out_channels=8).
    N, Cin, Cout, H, W = 2, 4, 8, 16, 16

    key = jax.random.PRNGKey(0)
    kx, kw, kb = jax.random.split(key, 3)

    x = jax.random.normal(kx, (N, Cin, H, W), dtype=jnp.float32)

    # Deterministic kaiming-normal-style init (leaky_relu, a=0 -> gain=sqrt(2)).
    fan_in = Cin * 3 * 3
    std = (2.0 / fan_in) ** 0.5
    w_oihw = std * jax.random.normal(kw, (Cout, Cin, 3, 3), dtype=jnp.float32)
    bias = 0.01 * jax.random.normal(kb, (Cout,), dtype=jnp.float32)

    # f32 path (default).
    out = jax.block_until_ready(conv_forward(x, w_oihw, bias))

    # Plain-JAX reference.
    ref = jax.lax.conv_general_dilated(
        x, w_oihw, window_strides=(1, 1), padding=((1, 1), (1, 1)),
        dimension_numbers=("NCHW", "OIHW", "NCHW"),
    ) + bias[None, :, None, None]
    ref = jnp.where(ref >= 0, ref, 0.1 * ref)

    assert out.shape == (N, Cout, H, W)
    assert jnp.allclose(out, ref, atol=1e-4, rtol=1e-4)

    # bf16 MXU-feeding path (v6e/v7x optimization); f32 accumulate + f32 epilogue.
    out_bf16 = jax.block_until_ready(
        conv_forward(x, w_oihw, bias, compute_dtype=jnp.bfloat16)
    )
    ref_bf16 = jax.lax.conv_general_dilated(
        x.astype(jnp.bfloat16), w_oihw.astype(jnp.bfloat16),
        window_strides=(1, 1), padding=((1, 1), (1, 1)),
        dimension_numbers=("NCHW", "OIHW", "NCHW"),
        preferred_element_type=jnp.float32,
    ) + bias[None, :, None, None]
    ref_bf16 = jnp.where(ref_bf16 >= 0, ref_bf16, 0.1 * ref_bf16)

    assert out_bf16.shape == (N, Cout, H, W)
    assert jnp.allclose(out_bf16, ref_bf16, atol=5e-2, rtol=5e-2)

    print("KERNEL_OK")
</pallas_src>

<mosaic_0001>
module attributes {stable_mosaic.version = 11 : i64} {
  func.func @_conv3x3_leaky_kernel(%arg0: i32, %arg1: memref<1x4x326xf32, #tpu.memory_space<vmem>>, %arg2: memref<9x8x4xf32, #tpu.memory_space<vmem>>, %arg3: memref<8x1xf32, #tpu.memory_space<vmem>>, %arg4: memref<1x8x288xf32, #tpu.memory_space<vmem>>) attributes {dimension_semantics = [#tpu.dimension_semantics<parallel>], iteration_bounds = array<i64: 2>, scalar_prefetch = 0 : i64, scratch_operands = 0 : i64, tpu.core_type = #tpu.core_type<tc>, window_params = [{transform_indices = @transform_0, window_bounds = array<i64: 1, 4, 326>}, {pipeline_mode = #tpu.pipeline_mode<synchronous>, transform_indices = @transform_1, window_bounds = array<i64: 9, 8, 4>}, {pipeline_mode = #tpu.pipeline_mode<synchronous>, transform_indices = @transform_2, window_bounds = array<i64: 8, 1>}, {transform_indices = @transform_3, window_bounds = array<i64: 1, 8, 288>}]} {
    %c0 = arith.constant 0 : index
    %c0_0 = arith.constant 0 : index
    %0 = vector.load %arg3[%c0, %c0_0] : memref<8x1xf32, #tpu.memory_space<vmem>>, vector<8x1xf32>
    %1 = vector.shape_cast %0 : vector<8x1xf32> to vector<8x1xf32>
    %2 = vector.broadcast %1 : vector<8x1xf32> to vector<8x288xf32>
    %c0_1 = arith.constant 0 : index
    %c0_2 = arith.constant 0 : index
    %c0_3 = arith.constant 0 : index
    %3 = vector.load %arg1[%c0_1, %c0_2, %c0_3] : memref<1x4x326xf32, #tpu.memory_space<vmem>>, vector<1x4x326xf32>
    %4 = vector.shape_cast %3 : vector<1x4x326xf32> to vector<4x326xf32>
    %5 = vector.extract_strided_slice %4 {offsets = [0, 0], sizes = [4, 288], strides = [1, 1]} : vector<4x326xf32> to vector<4x288xf32>
    %c0_4 = arith.constant 0 : index
    %c0_5 = arith.constant 0 : index
    %c0_6 = arith.constant 0 : index
    %6 = vector.load %arg2[%c0_4, %c0_5, %c0_6] : memref<9x8x4xf32, #tpu.memory_space<vmem>>, vector<1x8x4xf32>
    %7 = vector.shape_cast %6 : vector<1x8x4xf32> to vector<8x4xf32>
    %cst = arith.constant dense<0.000000e+00> : vector<8x288xf32>
    %8 = tpu.matmul %7, %5, %cst {dimension_numbers = #tpu.dot_dimension_numbers<[1], [0], [0], [1], [0, 0, 1, 1], [], []>} : vector<8x4xf32>, vector<4x288xf32>, vector<8x288xf32> -> vector<8x288xf32>
    %9 = arith.addf %2, %8 : vector<8x288xf32>
    %10 = vector.extract_strided_slice %4 {offsets = [0, 1], sizes = [4, 288], strides = [1, 1]} : vector<4x326xf32> to vector<4x288xf32>
    %c1 = arith.constant 1 : index
    %c0_7 = arith.constant 0 : index
    %c0_8 = arith.constant 0 : index
    %11 = vector.load %arg2[%c1, %c0_7, %c0_8] : memref<9x8x4xf32, #tpu.memory_space<vmem>>, vector<1x8x4xf32>
    %12 = vector.shape_cast %11 : vector<1x8x4xf32> to vector<8x4xf32>
    %cst_9 = arith.constant dense<0.000000e+00> : vector<8x288xf32>
    %13 = tpu.matmul %12, %10, %cst_9 {dimension_numbers = #tpu.dot_dimension_numbers<[1], [0], [0], [1], [0, 0, 1, 1], [], []>} : vector<8x4xf32>, vector<4x288xf32>, vector<8x288xf32> -> vector<8x288xf32>
    %14 = arith.addf %9, %13 : vector<8x288xf32>
    %15 = vector.extract_strided_slice %4 {offsets = [0, 2], sizes = [4, 288], strides = [1, 1]} : vector<4x326xf32> to vector<4x288xf32>
    %c2 = arith.constant 2 : index
    %c0_10 = arith.constant 0 : index
    %c0_11 = arith.constant 0 : index
    %16 = vector.load %arg2[%c2, %c0_10, %c0_11] : memref<9x8x4xf32, #tpu.memory_space<vmem>>, vector<1x8x4xf32>
    %17 = vector.shape_cast %16 : vector<1x8x4xf32> to vector<8x4xf32>
    %cst_12 = arith.constant dense<0.000000e+00> : vector<8x288xf32>
    %18 = tpu.matmul %17, %15, %cst_12 {dimension_numbers = #tpu.dot_dimension_numbers<[1], [0], [0], [1], [0, 0, 1, 1], [], []>} : vector<8x4xf32>, vector<4x288xf32>, vector<8x288xf32> -> vector<8x288xf32>
    %19 = arith.addf %14, %18 : vector<8x288xf32>
    %20 = vector.extract_strided_slice %4 {offsets = [0, 18], sizes = [4, 288], strides = [1, 1]} : vector<4x326xf32> to vector<4x288xf32>
    %c3 = arith.constant 3 : index
    %c0_13 = arith.constant 0 : index
    %c0_14 = arith.constant 0 : index
    %21 = vector.load %arg2[%c3, %c0_13, %c0_14] : memref<9x8x4xf32, #tpu.memory_space<vmem>>, vector<1x8x4xf32>
    %22 = vector.shape_cast %21 : vector<1x8x4xf32> to vector<8x4xf32>
    %cst_15 = arith.constant dense<0.000000e+00> : vector<8x288xf32>
    %23 = tpu.matmul %22, %20, %cst_15 {dimension_numbers = #tpu.dot_dimension_numbers<[1], [0], [0], [1], [0, 0, 1, 1], [], []>} : vector<8x4xf32>, vector<4x288xf32>, vector<8x288xf32> -> vector<8x288xf32>
    %24 = arith.addf %19, %23 : vector<8x288xf32>
    %25 = vector.extract_strided_slice %4 {offsets = [0, 19], sizes = [4, 288], strides = [1, 1]} : vector<4x326xf32> to vector<4x288xf32>
    %c4 = arith.constant 4 : index
    %c0_16 = arith.constant 0 : index
    %c0_17 = arith.constant 0 : index
    %26 = vector.load %arg2[%c4, %c0_16, %c0_17] : memref<9x8x4xf32, #tpu.memory_space<vmem>>, vector<1x8x4xf32>
    %27 = vector.shape_cast %26 : vector<1x8x4xf32> to vector<8x4xf32>
    %cst_18 = arith.constant dense<0.000000e+00> : vector<8x288xf32>
    %28 = tpu.matmul %27, %25, %cst_18 {dimension_numbers = #tpu.dot_dimension_numbers<[1], [0], [0], [1], [0, 0, 1, 1], [], []>} : vector<8x4xf32>, vector<4x288xf32>, vector<8x288xf32> -> vector<8x288xf32>
    %29 = arith.addf %24, %28 : vector<8x288xf32>
    %30 = vector.extract_strided_slice %4 {offsets = [0, 20], sizes = [4, 288], strides = [1, 1]} : vector<4x326xf32> to vector<4x288xf32>
    %c5 = arith.constant 5 : index
    %c0_19 = arith.constant 0 : index
    %c0_20 = arith.constant 0 : index
    %31 = vector.load %arg2[%c5, %c0_19, %c0_20] : memref<9x8x4xf32, #tpu.memory_space<vmem>>, vector<1x8x4xf32>
    %32 = vector.shape_cast %31 : vector<1x8x4xf32> to vector<8x4xf32>
    %cst_21 = arith.constant dense<0.000000e+00> : vector<8x288xf32>
    %33 = tpu.matmul %32, %30, %cst_21 {dimension_numbers = #tpu.dot_dimension_numbers<[1], [0], [0], [1], [0, 0, 1, 1], [], []>} : vector<8x4xf32>, vector<4x288xf32>, vector<8x288xf32> -> vector<8x288xf32>
    %34 = arith.addf %29, %33 : vector<8x288xf32>
    %35 = vector.extract_strided_slice %4 {offsets = [0, 36], sizes = [4, 288], strides = [1, 1]} : vector<4x326xf32> to vector<4x288xf32>
    %c6 = arith.constant 6 : index
    %c0_22 = arith.constant 0 : index
    %c0_23 = arith.constant 0 : index
    %36 = vector.load %arg2[%c6, %c0_22, %c0_23] : memref<9x8x4xf32, #tpu.memory_space<vmem>>, vector<1x8x4xf32>
    %37 = vector.shape_cast %36 : vector<1x8x4xf32> to vector<8x4xf32>
    %cst_24 = arith.constant dense<0.000000e+00> : vector<8x288xf32>
    %38 = tpu.matmul %37, %35, %cst_24 {dimension_numbers = #tpu.dot_dimension_numbers<[1], [0], [0], [1], [0, 0, 1, 1], [], []>} : vector<8x4xf32>, vector<4x288xf32>, vector<8x288xf32> -> vector<8x288xf32>
    %39 = arith.addf %34, %38 : vector<8x288xf32>
    %40 = vector.extract_strided_slice %4 {offsets = [0, 37], sizes = [4, 288], strides = [1, 1]} : vector<4x326xf32> to vector<4x288xf32>
    %c7 = arith.constant 7 : index
    %c0_25 = arith.constant 0 : index
    %c0_26 = arith.constant 0 : index
    %41 = vector.load %arg2[%c7, %c0_25, %c0_26] : memref<9x8x4xf32, #tpu.memory_space<vmem>>, vector<1x8x4xf32>
    %42 = vector.shape_cast %41 : vector<1x8x4xf32> to vector<8x4xf32>
    %cst_27 = arith.constant dense<0.000000e+00> : vector<8x288xf32>
    %43 = tpu.matmul %42, %40, %cst_27 {dimension_numbers = #tpu.dot_dimension_numbers<[1], [0], [0], [1], [0, 0, 1, 1], [], []>} : vector<8x4xf32>, vector<4x288xf32>, vector<8x288xf32> -> vector<8x288xf32>
    %44 = arith.addf %39, %43 : vector<8x288xf32>
    %45 = vector.extract_strided_slice %4 {offsets = [0, 38], sizes = [4, 288], strides = [1, 1]} : vector<4x326xf32> to vector<4x288xf32>
    %c8 = arith.constant 8 : index
    %c0_28 = arith.constant 0 : index
    %c0_29 = arith.constant 0 : index
    %46 = vector.load %arg2[%c8, %c0_28, %c0_29] : memref<9x8x4xf32, #tpu.memory_space<vmem>>, vector<1x8x4xf32>
    %47 = vector.shape_cast %46 : vector<1x8x4xf32> to vector<8x4xf32>
    %cst_30 = arith.constant dense<0.000000e+00> : vector<8x288xf32>
    %48 = tpu.matmul %47, %45, %cst_30 {dimension_numbers = #tpu.dot_dimension_numbers<[1], [0], [0], [1], [0, 0, 1, 1], [], []>} : vector<8x4xf32>, vector<4x288xf32>, vector<8x288xf32> -> vector<8x288xf32>
    %49 = arith.addf %44, %48 : vector<8x288xf32>
    %cst_31 = arith.constant 0.000000e+00 : f32
    %50 = vector.broadcast %cst_31 : f32 to vector<8x288xf32>
    %51 = arith.cmpf oge, %49, %50 : vector<8x288xf32>
    %cst_32 = arith.constant 1.000000e-01 : f32
    %52 = vector.broadcast %cst_32 : f32 to vector<8x288xf32>
    %53 = arith.mulf %52, %49 : vector<8x288xf32>
    %54 = arith.select %51, %49, %53 : vector<8x288xi1>, vector<8x288xf32>
    %c0_33 = arith.constant 0 : index
    %c0_34 = arith.constant 0 : index
    %c0_35 = arith.constant 0 : index
    %55 = vector.load %arg4[%c0_33, %c0_34, %c0_35] : memref<1x8x288xf32, #tpu.memory_space<vmem>>, vector<1x8x288xf32>
    %56 = vector.shape_cast %55 : vector<1x8x288xf32> to vector<8x288xf32>
    %57 = vector.shape_cast %54 : vector<8x288xf32> to vector<1x8x288xf32>
    tpu.vector_store %arg4[%c0_33, %c0_34, %c0_35], %57 {strides = array<i32>} : memref<1x8x288xf32, #tpu.memory_space<vmem>>, vector<1x8x288xf32>,
    return
  }
  func.func @transform_0(%arg0: i32) -> (i32, i32, i32) {
    %c0_i32 = arith.constant 0 : i32
    %c0_i32_0 = arith.constant 0 : i32
    %c0_i32_1 = arith.constant 0 : i32
    return %arg0, %c0_i32, %c0_i32_0 : i32, i32, i32
  }
  func.func @transform_1(%arg0: i32) -> (i32, i32, i32) {
    %c0_i32 = arith.constant 0 : i32
    %c0_i32_0 = arith.constant 0 : i32
    %c0_i32_1 = arith.constant 0 : i32
    %c0_i32_2 = arith.constant 0 : i32
    return %c0_i32, %c0_i32_0, %c0_i32_1 : i32, i32, i32
  }
  func.func @transform_2(%arg0: i32) -> (i32, i32) {
    %c0_i32 = arith.constant 0 : i32
    %c0_i32_0 = arith.constant 0 : i32
    %c0_i32_1 = arith.constant 0 : i32
    return %c0_i32, %c0_i32_0 : i32, i32
  }
  func.func @transform_3(%arg0: i32) -> (i32, i32, i32) {
    %c0_i32 = arith.constant 0 : i32
    %c0_i32_0 = arith.constant 0 : i32
    %c0_i32_1 = arith.constant 0 : i32
    return %arg0, %c0_i32, %c0_i32_0 : i32, i32, i32
  }
}

</mosaic_0001>

<bundles_post_ra>
// kernel: tpu_custom_call.1
= control target key start
LH: loop header
LB: loop body
LE: loop exit
PB: predicated region body
PF: predicated region fallthrough
CT: control target
= control target key end

     0   :  { %8 = vsyncpa [#allocation3], 0  ;;  %s2222_s0 = inlined_call_operand.vmem [shape: f32[2,4,326], index: 0, kind: input, shape index: {}]   ;;  %s2223_s1 = inlined_call_operand.vmem [shape: f32[9,8,4], index: 1, kind: input, shape index: {}]   ;;  %s2224_s2 = inlined_call_operand.vmem [shape: f32[8,1], index: 2, kind: input, shape index: {}]   ;;  %s2225_s3 = inlined_call_operand.hbm [shape: f32[2,8,288], index: 3, kind: output, shape index: {}]  }
   0x1   :  { %10 = vsyncpa [#allocation3 + $0x1], 0  ;;  %s2008_s12 = smov 0   ;;  %s2010_s13 = smov 0  }
   0x2   :  { %s2012_s14 = smov 0   ;;  %s2014_s15 = smov 0  }
   0x3 LB: > { %s2029_s16 = sadd.s32 4294967295, %s1974_s15   ;;  %s1735_s17 = sadd.s32 4294967294, %s1974_s15   ;;  %s1974_s15 = sphi %s2014_s15, %s2231_s15   ;;  %s1970_s14 = sphi %s2012_s14, %s2230_s14   ;;  %s1966_s13 = sphi %s2010_s13, %s2229_s13   ;;  %s1962_s12 = sphi %s2008_s12, %s2228_s12  }
   0x4   : > { %s2033_s18 = sadd.s32 1, %s1974_s15   ;;  %s91_s19 = sadd.s32 1, %s1970_s14 }
   0x5   : > { %s88_s20 = ssub.s32 %s1974_s15, %s2033_s18  ;;  %p101_p0 = scmp.ne.s32.totalorder %s1970_s14, %s1966_s13 }
   0x6   : > { %p89_p1 = scmp.eq.s32.totalorder %s88_s20, 0  ;;  %p102_p2 = scmp.eq.s32.totalorder %s2029_s16, 1 }
   0x7   : > { %p107_p3 = scmp.ne.s32.totalorder %s1966_s13, %s1962_s12  ;;  %p108_p4 = scmp.eq.s32.totalorder %s1735_s17, 1 }
   0x8   : > { %s2044_s21 = scalar_select %p89_p1, %s1970_s14, %s91_s19  }
   0x9   : > { %p2046_p5 = por %p102_p2, %p101_p0  ;;  %p2050_p6 = por %p108_p4, %p107_p3 }
   0xa   : > { %p1738_p7 = scmp.ge.s32.totalorder %s1974_s15, 1  ;;  %p140_p8 = scmp.lt.s32.totalorder %s1974_s15, 3 }
   0xc   : > { %p141_p9 = pnand %p1738_p7, %p140_p8 }
   0xd   : > { %p164_p10 = scmp.lt.s32.totalorder (!%p141_p9), %s2029_s16, 1  ;;  %s1978_s4 = smov (!%p141_p9), 127  }
   0xe   : > { %144 = sbr.rel (%p141_p9) target bundleno = 400 (0x190), region = 32  ;;  %s1979_s5 = smov (!%p141_p9), 126  }
   0xf   : > { %s1980_s6 = smov (!%p141_p9), 110   ;;  %s1981_s7 = smov (!%p141_p9), 109  }
  0x10   : > { %s1982_s8 = smov (!%p141_p9), 108   ;;  %s1983_s9 = smov (!%p141_p9), 92  }
  0x11   : > { %s1985_s10 = smov (!%p141_p9), 91   ;;  %s1986_s11 = smov (!%p141_p9), 90  }
  0x12   : > { %s161_s17 = sand.u32 (!%p141_p9), 1, %s1966_s13   ;;  %s1861_s20 = smul.u32 (!%p141_p9), 384, %s2029_s16 }
  0x13   : > { %v1976_v0 = vmov 0.0   ;;  %vm1977_vm0 = vmmov 0   ;;  %s165_s24 = scalar_select %p164_p10, %s2029_s16, 1  ;;  %vm185_vm1 = vcmask 1043456   ;;  %v177_v3 = vld [vmem:[%s2223_s1] sm:$0xff]  ;;  %vm181_vm2 = vcmask 31744  }
  0x14   : > { %1814 = vmatprep.subr.mxu1 %v1976_v0  ;;  %1816 = vmatprep.mubr.msk.f32.mxu1 %vm1977_vm0, %v1976_v0  ;;  %v1984_v5 = vmov 0   ;;  %v169_v6 = vld [vmem:[%s2224_s2] sm:$0xff]  ;;  %v1745_v7 = vld [vmem:[%s2223_s1 + $0x8] sm:$0xff]  ;;  %v1751_v10 = vld [vmem:[%s2223_s1 + $0x10] sm:$0xff]  ;;  %vm344_vm3 = vcmask 1039360   ;;  %vm508_vm4 = vcmask 1031168  }
  0x15   : > { %256 = vmatprep.mubr.f32.mxu0 %v1976_v0  ;;  %s1860_s25 = smul.u32 12, %s165_s24  ;;  %1912 = vset.pattern.permute.xlu0 %v1984_v5  ;;  %vm672_vm5 = vcmask 900096   ;;  %v1757_v21 = vld [vmem:[%s2223_s1 + $0x18] sm:$0xff]  ;;  %vm836_vm6 = vcmask 891904   ;;  %v1763_v28 = vld [vmem:[%s2223_s1 + $0x20] sm:$0xff]  ;;  %vm1000_vm7 = vcmask 883712  }
  0x16   : > { %v1769_v33 = vld [vmem:[%s2223_s1 + $0x28] sm:$0xff]  ;;  %vm1164_vm8 = vcmask 752640   ;;  %v1775_v38 = vld [vmem:[%s2223_s1 + $0x30] sm:$0xff]  ;;  %vm1328_vm9 = vcmask 744448   ;;  %v1781_v43 = vld [vmem:[%s2223_s1 + $0x38] sm:$0xff]  ;;  %vm1492_vm10 = vcmask 736256  }
  0x17   : > { %s168_s28 = scalar_lea.vmem %s2222_s0, %s1860_s25  ;;  %v1787_v50 = vld [vmem:[%s2223_s1 + $0x40] sm:$0xff]  ;;  %s1859_s19 = smul.u32 24, %s161_s17  ;;  %vm1659_vm11 = vcmask 261120  }
  0x18   : > { %v176_v1 = vld [vmem:[%s168_s28 + $0x8] sm:$0xf]  ;;  %v175_v2 = vld [vmem:[%s168_s28] sm:$0xff]  ;;  %s2185_s28 = scalar_lea.hbm %s2225_s3, %s1861_s20  ;;  %s1662_s16 = scalar_lea.sflag [#allocation3], %s161_s17 }
  0x19   : > { %342 = vrot.lane.b32.xlu0 %v176_v1, %s1978_s4  ;;  %338 = vrot.lane.b32.xlu1 %v175_v2, %s1978_s4  ;;  %v180_v4 = vcombine.high %v175_v2, %v175_v2  ;;  %s163_s24 = scalar_lea.vmem [#allocation2], %s1859_s19  ;;  %s1987_s30 = smov [#allocation2]  }
  0x1a   : > { %1815 = vmatpush3.msk.msra.mxu1 %vm185_vm1, %v176_v1  ;;  %s1676_s25 = sshll.u32 %s163_s24, 4  ;;  %s1677_s25 = int_to_ptr.vmem [resolvable:$true] %s1676_s25 }
  0x1b   : > { %1819 = vmatprep.subr.mxu1 %v1976_v0  ;;  %1817 = vmatmul.mubr.msk.f32.vlgmr.msra.gmra.mxu1 %vm181_vm2, %v177_v3  ;;  %s1914_s29 = scalar_lea.vmem %s1677_s25, 384 }
  0x1c   : > { %1821 = vmatprep.mubr.msk.f32.mxu1 %vm1977_vm0, %v1976_v0  ;;  %1740 = vmatprep.subr.msk.mxu0 %vm185_vm1, %v180_v4  ;;  %p1915_p11 = scmp.ne.s32.totalorder %s1677_s25, %s1914_s29 }
  0x1d   : > { %506 = vrot.lane.b32.xlu0 %v176_v1, %s1979_s5  ;;  %502 = vrot.lane.b32.xlu1 %v175_v2, %s1979_s5 }
  0x1e   : > { %1741 = vmatpush1.msk.msra.mxu0 %vm185_vm1, %v175_v2  ;;  %p1916_p12 = pnand %p1915_p11, %p2046_p5 }
  0x1f   : > { %1742 = vmatmul.mubr.msk.f32.vlgmr.msra.gmra.mxu0 %vm181_vm2, %v177_v3 }
  0x20   : > { %420 = vmatprep.mubr.f32.mxu0 %v1976_v0  ;;  %p1917_p13 = pneg %p1916_p12 }
  0x21   : > { %504 = vrot.lane.b32.xlu1 %v180_v4, %s1979_s5  ;;  %340 = vrot.lane.b32.xlu0 %v180_v4, %s1978_s4  ;;  %s1918_s4 = sshll.u32 %s1987_s30, 4  ;;  %s1919_s4 = int_to_ptr.vmem [resolvable:$false] %s1918_s4 }
  0x22   : > { %s1920_s5 = scalar_lea.vmem %s1919_s4, 768  ;;  %p1921_p0 = scmp.lt.s32.totalorder %s1677_s25, %s1919_s4 }
  0x23   : > { %p1922_p1 = scmp.lt.s32.totalorder %s1920_s5, %s1914_s29 }
  0x25   : > { %670 = vrot.lane.b32.xlu1 %v176_v1, %s1980_s6  ;;  %668 = vrot.lane.b32.xlu0 %v180_v4, %s1980_s6  ;;  %p1923_p2 = por %p1922_p1, %p1921_p0 }
  0x27   : > { %p1924_p3 = pnand %p1923_p2, %p1917_p13 }
  0x29   : > { %832 = vrot.lane.b32.xlu1 %v180_v4, %s1981_s7  ;;  %666 = vrot.lane.b32.xlu0 %v175_v2, %s1980_s6 }
  0x2d   : > { %830 = vrot.lane.b32.xlu1 %v175_v2, %s1981_s7  ;;  %834 = vrot.lane.b32.xlu0 %v176_v1, %s1981_s7 }
  0x31   : > { %998 = vrot.lane.b32.xlu1 %v176_v1, %s1982_s8  ;;  %996 = vrot.lane.b32.xlu0 %v180_v4, %s1982_s8 }
  0x35   : > { %1160 = vrot.lane.b32.xlu1 %v180_v4, %s1983_s9  ;;  %994 = vrot.lane.b32.xlu0 %v175_v2, %s1982_s8 }
  0x39   : > { %1158 = vrot.lane.b32.xlu1 %v175_v2, %s1983_s9  ;;  %1162 = vrot.lane.b32.xlu0 %v176_v1, %s1983_s9 }
  0x3d   : > { %1326 = vrot.lane.b32.xlu1 %v176_v1, %s1985_s10  ;;  %1324 = vrot.lane.b32.xlu0 %v180_v4, %s1985_s10 }
  0x41   : > { %1488 = vrot.lane.b32.xlu1 %v180_v4, %s1986_s11  ;;  %1322 = vrot.lane.b32.xlu0 %v175_v2, %s1985_s10 }
  0x45   : > { %1486 = vrot.lane.b32.xlu1 %v175_v2, %s1986_s11  ;;  %1490 = vrot.lane.b32.xlu0 %v176_v1, %s1986_s11 }
  0x49   : > { %172 = vperm.xlu0 %1912, %v169_v6  }
  0x8b   : > { %v343_v8 = vpop.permute.xlu0 %342  ;;  %v339_v9 = vpop.permute.xlu1 %338 }
  0x8c   : > { %1820 = vmatpush3.msk.msra.mxu1 %vm185_vm1, %v343_v8 }
  0x8d   : > { %1824 = vmatprep.subr.mxu1 %v1976_v0  ;;  %1822 = vmatmul.mubr.msk.f32.vlgmr.msra.gmra.mxu1 %vm181_vm2, %v1745_v7 }
  0x8e   : > { %1826 = vmatprep.mubr.msk.f32.mxu1 %vm1977_vm0, %v1976_v0 }
  0x8f   : > { %v507_v11 = vpop.permute.xlu0 %506  ;;  %v503_v12 = vpop.permute.xlu1 %502 }
  0x90   : > { %1825 = vmatpush3.msk.msra.mxu1 %vm185_vm1, %v507_v11 }
  0x91   : > { %1829 = vmatprep.subr.mxu1 %v1976_v0  ;;  %1827 = vmatmul.mubr.msk.f32.vlgmr.msra.gmra.mxu1 %vm181_vm2, %v1751_v10 }
  0x92   : > { %1831 = vmatprep.mubr.msk.f32.mxu1 %vm1977_vm0, %v1976_v0 }
  0x93   : > { %v505_v13 = vpop.permute.xlu1 %504  ;;  %v341_v14 = vpop.permute.xlu0 %340 }
  0x94   : > { %v345_v15 = vsel %vm344_vm3, %v339_v9, %v341_v14  ;;  %v346_v16 = vsel %vm344_vm3, %v341_v14, %v343_v8  ;;  %v510_v17 = vsel %vm508_vm4, %v505_v13, %v507_v11  ;;  %v509_v18 = vsel %vm508_vm4, %v503_v12, %v505_v13 }
  0x95   : > { %1746 = vmatprep.subr.msk.mxu0 %vm185_vm1, %v346_v16 }
  0x96   : > { %1747 = vmatpush1.msk.msra.mxu0 %vm185_vm1, %v345_v15 }
  0x97   : > { %v671_v19 = vpop.permute.xlu1 %670  ;;  %v669_v20 = vpop.permute.xlu0 %668  ;;  %1752 = vmatprep.subr.msk.mxu0 %vm185_vm1, %v510_v17  ;;  %1748 = vmatmul.mubr.msk.f32.vlgmr.msra.gmra.mxu0 %vm181_vm2, %v1745_v7 }
  0x98   : > { %v674_v22 = vsel %vm672_vm5, %v669_v20, %v671_v19  ;;  %1753 = vmatpush1.msk.msra.mxu0 %vm185_vm1, %v509_v18  ;;  %1830 = vmatpush3.msk.msra.mxu1 %vm185_vm1, %v671_v19 }
  0x99   : > { %1758 = vmatprep.subr.msk.mxu0 %vm185_vm1, %v674_v22  ;;  %584 = vmatprep.mubr.f32.mxu0 %v1976_v0 }
  0x9a   : > { %1834 = vmatprep.subr.mxu1 %v1976_v0  ;;  %1832 = vmatmul.mubr.msk.f32.vlgmr.msra.gmra.mxu1 %vm181_vm2, %v1757_v21 }
  0x9b   : > { %v833_v23 = vpop.permute.xlu1 %832  ;;  %v667_v24 = vpop.permute.xlu0 %666  ;;  %1754 = vmatmul.mubr.msk.f32.vlgmr.msra.gmra.mxu0 %vm181_vm2, %v1751_v10  ;;  %1836 = vmatprep.mubr.msk.f32.mxu1 %vm1977_vm0, %v1976_v0 }
  0x9c   : > { %v673_v25 = vsel %vm672_vm5, %v667_v24, %v669_v20  ;;  %748 = vmatprep.mubr.f32.mxu0 %v1976_v0 }
  0x9d   : > { %1759 = vmatpush1.msk.msra.mxu0 %vm185_vm1, %v673_v25 }
  0x9f   : > { %v831_v26 = vpop.permute.xlu1 %830  ;;  %v835_v27 = vpop.permute.xlu0 %834  ;;  %1760 = vmatmul.mubr.msk.f32.vlgmr.msra.gmra.mxu0 %vm181_vm2, %v1757_v21 }
  0xa0   : > { %v837_v29 = vsel %vm836_vm6, %v831_v26, %v833_v23  ;;  %v838_v30 = vsel %vm836_vm6, %v833_v23, %v835_v27  ;;  %1835 = vmatpush3.msk.msra.mxu1 %vm185_vm1, %v835_v27  ;;  %912 = vmatprep.mubr.f32.mxu0 %v1976_v0 }
  0xa1   : > { %1764 = vmatprep.subr.msk.mxu0 %vm185_vm1, %v838_v30  ;;  %1839 = vmatprep.subr.mxu1 %v1976_v0 }
  0xa2   : > { %1765 = vmatpush1.msk.msra.mxu0 %vm185_vm1, %v837_v29  ;;  %1837 = vmatmul.mubr.msk.f32.vlgmr.msra.gmra.mxu1 %vm181_vm2, %v1763_v28 }
  0xa3   : > { %v999_v31 = vpop.permute.xlu1 %998  ;;  %v997_v32 = vpop.permute.xlu0 %996  ;;  %1766 = vmatmul.mubr.msk.f32.vlgmr.msra.gmra.mxu0 %vm181_vm2, %v1763_v28  ;;  %1841 = vmatprep.mubr.msk.f32.mxu1 %vm1977_vm0, %v1976_v0 }
  0xa4   : > { %v1002_v34 = vsel %vm1000_vm7, %v997_v32, %v999_v31  ;;  %1840 = vmatpush3.msk.msra.mxu1 %vm185_vm1, %v999_v31  ;;  %1076 = vmatprep.mubr.f32.mxu0 %v1976_v0 }
  0xa5   : > { %1770 = vmatprep.subr.msk.mxu0 %vm185_vm1, %v1002_v34  ;;  %1844 = vmatprep.subr.mxu1 %v1976_v0 }
  0xa6   : > { %1842 = vmatmul.mubr.msk.f32.vlgmr.msra.gmra.mxu1 %vm181_vm2, %v1769_v33 }
  0xa7   : > { %v1161_v35 = vpop.permute.xlu1 %1160  ;;  %v995_v36 = vpop.permute.xlu0 %994  ;;  %1846 = vmatprep.mubr.msk.f32.mxu1 %vm1977_vm0, %v1976_v0 }
  0xa8   : > { %v1001_v37 = vsel %vm1000_vm7, %v995_v36, %v997_v32 }
  0xa9   : > { %1771 = vmatpush1.msk.msra.mxu0 %vm185_vm1, %v1001_v37 }
  0xaa   : > { %1772 = vmatmul.mubr.msk.f32.vlgmr.msra.gmra.mxu0 %vm181_vm2, %v1769_v33 }
  0xab   : > { %v1159_v39 = vpop.permute.xlu1 %1158  ;;  %v1163_v40 = vpop.permute.xlu0 %1162  ;;  %1240 = vmatprep.mubr.f32.mxu0 %v1976_v0 }
  0xac   : > { %v1165_v41 = vsel %vm1164_vm8, %v1159_v39, %v1161_v35  ;;  %v1166_v42 = vsel %vm1164_vm8, %v1161_v35, %v1163_v40  ;;  %1845 = vmatpush3.msk.msra.mxu1 %vm185_vm1, %v1163_v40 }
  0xad   : > { %1776 = vmatprep.subr.msk.mxu0 %vm185_vm1, %v1166_v42  ;;  %1847 = vmatmul.mubr.msk.f32.vlgmr.msra.gmra.mxu1 %vm181_vm2, %v1775_v38 }
  0xae   : > { %1777 = vmatpush1.msk.msra.mxu0 %vm185_vm1, %v1165_v41  ;;  %1849 = vmatprep.subr.mxu1 %v1976_v0 }
  0xaf   : > { %v1327_v44 = vpop.permute.xlu1 %1326  ;;  %v1325_v45 = vpop.permute.xlu0 %1324  ;;  %1778 = vmatmul.mubr.msk.f32.vlgmr.msra.gmra.mxu0 %vm181_vm2, %v1775_v38  ;;  %1851 = vmatprep.mubr.msk.f32.mxu1 %vm1977_vm0, %v1976_v0 }
  0xb0   : > { %v1330_v46 = vsel %vm1328_vm9, %v1325_v45, %v1327_v44  ;;  %1850 = vmatpush3.msk.msra.mxu1 %vm185_vm1, %v1327_v44  ;;  %1404 = vmatprep.mubr.f32.mxu0 %v1976_v0 }
  0xb1   : > { %1782 = vmatprep.subr.msk.mxu0 %vm185_vm1, %v1330_v46  ;;  %1852 = vmatmul.mubr.msk.f32.vlgmr.msra.gmra.mxu1 %vm181_vm2, %v1781_v43 }
  0xb2   : > { %1854 = vmatprep.subr.mxu1 %v1976_v0  ;;  %1856 = vmatprep.mubr.msk.f32.mxu1 %vm1977_vm0, %v1976_v0 }
  0xb3   : > { %v1489_v47 = vpop.permute.xlu1 %1488  ;;  %v1323_v48 = vpop.permute.xlu0 %1322 }
  0xb4   : > { %v1329_v49 = vsel %vm1328_vm9, %v1323_v48, %v1325_v45 }
  0xb5   : > { %1783 = vmatpush1.msk.msra.mxu0 %vm185_vm1, %v1329_v49 }
  0xb6   : > { %1784 = vmatmul.mubr.msk.f32.vlgmr.msra.gmra.mxu0 %vm181_vm2, %v1781_v43 }
  0xb7   : > { %v1487_v51 = vpop.permute.xlu1 %1486  ;;  %v1491_v52 = vpop.permute.xlu0 %1490  ;;  %1568 = vmatprep.mubr.f32.mxu0 %v1976_v0 }
  0xb8   : > { %v1493_v53 = vsel %vm1492_vm10, %v1487_v51, %v1489_v47  ;;  %v1494_v54 = vsel %vm1492_vm10, %v1489_v47, %v1491_v52  ;;  %1855 = vmatpush3.msk.msra.mxu1 %vm185_vm1, %v1491_v52 }
  0xb9   : > { %1788 = vmatprep.subr.msk.mxu0 %vm185_vm1, %v1494_v54  ;;  %1857 = vmatmul.mubr.msk.f32.vlgmr.msra.gmra.mxu1 %vm181_vm2, %v1787_v50 }
  0xba   : > { %1789 = vmatpush1.msk.msra.mxu0 %vm185_vm1, %v1493_v53 }
  0xbb   : > { %1790 = vmatmul.mubr.msk.f32.vlgmr.msra.gmra.mxu0 %vm181_vm2, %v1787_v50 }
  0xc4   : > { %v173_v5 = vpop.permute.xlu0 %172 }
  0xdb   : > { %v329_v55 = vpop.f32.mrf.mxu1 }
  0xdc   : > { %v335_v7 = vadd.f32 %v329_v55, %v173_v5 }
  0xdd   : > { %v1818_v56 = vpop.f32.mrf.mxu1 }
  0xdf   : > { %v258_v58 = vpop.f32.mrf.mxu0 }
  0xe0   : > { %v333_v10 = vadd.f32 %v258_v58, %v173_v5 }
  0xe1   : > { %v260_v61 = vpop.f32.mrf.mxu0 }
  0xe2   : > { %v334_v15 = vadd.f32 %v260_v61, %v173_v5 }
 0x14d   : > { %v493_v57 = vpop.f32.mrf.mxu1 }
 0x14e   : > { %v499_v11 = vadd.f32 %v493_v57, %v335_v7 }
 0x14f   : > { %v1823_v59 = vpop.f32.mrf.mxu1 }
 0x151   : > { %v657_v60 = vpop.f32.mrf.mxu1 }
 0x152   : > { %v663_v17 = vadd.f32 %v657_v60, %v499_v11 }
 0x153   : > { %v1828_v62 = vpop.f32.mrf.mxu1 }
 0x157   : > { %v422_v63 = vpop.f32.mrf.mxu0 }
 0x158   : > { %v497_v16 = vadd.f32 %v422_v63, %v333_v10 }
 0x159   : > { %v424_v0 = vpop.f32.mrf.mxu0 }
 0x15a   : > { %v821_v1 = vpop.f32.mrf.mxu1  ;;  %v498_v21 = vadd.f32 %v424_v0, %v334_v15 }
 0x15b   : > { %v586_v2 = vpop.f32.mrf.mxu0  ;;  %v827_v23 = vadd.f32 %v821_v1, %v663_v17 }
 0x15c   : > { %v1833_v3 = vpop.f32.mrf.mxu1  ;;  %v661_v22 = vadd.f32 %v586_v2, %v497_v16 }
 0x15d   : > { %v588_v4 = vpop.f32.mrf.mxu0 }
 0x15e   : > { %v662_v27 = vadd.f32 %v588_v4, %v498_v21 }
 0x15f   : > { %v750_v6 = vpop.f32.mrf.mxu0 }
 0x160   : > { %v825_v28 = vadd.f32 %v750_v6, %v661_v22 }
 0x161   : > { %v752_v8 = vpop.f32.mrf.mxu0 }
 0x162   : > { %v985_v9 = vpop.f32.mrf.mxu1  ;;  %v826_v33 = vadd.f32 %v752_v8, %v662_v27 }
 0x163   : > { %v914_v12 = vpop.f32.mrf.mxu0  ;;  %v991_v29 = vadd.f32 %v985_v9, %v827_v23 }
 0x164   : > { %v1838_v13 = vpop.f32.mrf.mxu1  ;;  %v989_v34 = vadd.f32 %v914_v12, %v825_v28 }
 0x165   : > { %v916_v18 = vpop.f32.mrf.mxu0 }
 0x166   : > { %v1149_v14 = vpop.f32.mrf.mxu1  ;;  %v990_v37 = vadd.f32 %v916_v18, %v826_v33 }
 0x167   : > { %v1155_v35 = vadd.f32 %v1149_v14, %v991_v29 }
 0x168   : > { %v1843_v19 = vpop.f32.mrf.mxu1 }
 0x16a   : > { %v1078_v20 = vpop.f32.mrf.mxu0 }
 0x16b   : > { %v1153_v38 = vadd.f32 %v1078_v20, %v989_v34 }
 0x16c   : > { %v1080_v24 = vpop.f32.mrf.mxu0 }
 0x16d   : > { %v1313_v25 = vpop.f32.mrf.mxu1  ;;  %v1154_v41 = vadd.f32 %v1080_v24, %v990_v37 }
 0x16e   : > { %v1319_v39 = vadd.f32 %v1313_v25, %v1155_v35 }
 0x16f   : > { %v1848_v26 = vpop.f32.mrf.mxu1  ;;  %v1242_v30 = vpop.f32.mrf.mxu0 }
 0x170   : > { %v1317_v42 = vadd.f32 %v1242_v30, %v1153_v38 }
 0x171   : > { %v1477_v31 = vpop.f32.mrf.mxu1  ;;  %v1244_v36 = vpop.f32.mrf.mxu0 }
 0x172   : > { %v1483_v43 = vadd.f32 %v1477_v31, %v1319_v39  ;;  %v1318_v46 = vadd.f32 %v1244_v36, %v1154_v41 }
 0x173   : > { %v1853_v32 = vpop.f32.mrf.mxu1 }
 0x176   : > { %v1406_v40 = vpop.f32.mrf.mxu0 }
 0x177   : > { %v1481_v47 = vadd.f32 %v1406_v40, %v1317_v42 }
 0x178   : > { %v1408_v44 = vpop.f32.mrf.mxu0 }
 0x179   : > { %v1641_v45 = vpop.f32.mrf.mxu1  ;;  %v1482_v51 = vadd.f32 %v1408_v44, %v1318_v46 }
 0x17a   : > { %v1647_v48 = vadd.f32 %v1641_v45, %v1483_v43 }
 0x17b   : > { %v1570_v49 = vpop.f32.mrf.mxu0  ;;  %v1858_v50 = vpop.f32.mrf.mxu1 }
 0x17c   : > { %vm1650_vm12 = vcmp.ge.f32.partialorder %v1647_v48, 0.0  ;;  %v1653_v52 = vmul.f32 0.1, %v1647_v48  ;;  %v1645_v53 = vadd.f32 %v1570_v49, %v1481_v47 }
 0x17d   : > { %v1572_v54 = vpop.f32.mrf.mxu0 }
 0x17e   : > { %v1656_v55 = vsel %vm1650_vm12, %v1647_v48, %v1653_v52  ;;  %vm1648_vm13 = vcmp.ge.f32.partialorder %v1645_v53, 0.0  ;;  %v1651_v56 = vmul.f32 0.1, %v1645_v53  ;;  %v1646_v57 = vadd.f32 %v1572_v54, %v1482_v51 }
 0x17f   : > { %1660 = vst.msk [vmem:[%s163_s24 + $0x10] sm:$0xff] %vm1659_vm11, %v1656_v55 }
 0x180   : > { %v1654_v58 = vsel %vm1648_vm13, %v1645_v53, %v1651_v56  ;;  %vm1649_vm14 = vcmp.ge.f32.partialorder %v1646_v57, 0.0  ;;  %v1652_v59 = vmul.f32 0.1, %v1646_v57 }
 0x181   : > { %1657 = vst [vmem:[%s163_s24] sm:$0xff] %v1654_v58 }
 0x182   : > { %v1655_v60 = vsel %vm1649_vm14, %v1646_v57, %v1652_v59 }
 0x183   : > { %1658 = vst [vmem:[%s163_s24 + $0x8] sm:$0xff] %v1655_v60 }
 0x184   : > { %1927 = shalt.err (!%p1924_p3)
}
 0x185   : > { %s1928_s6 = scalar_lea.hbm %s2185_s28, 384  ;;  %s1932_s9 = scalar_lea.hbm %s2225_s3, 768 }
 0x186   : > { %p1929_p4 = scmp.ne.s32.totalorder %s2185_s28, %s1928_s6  ;;  %p1933_p9 = scmp.lt.s32.totalorder %s2185_s28, %s2225_s3 }
 0x187   : > { %p1934_p10 = scmp.lt.s32.totalorder %s1932_s9, %s1928_s6 }
 0x188   : > { %p1930_p7 = pnand %p1929_p4, %p2046_p5 }
 0x189   : > { %p1935_p11 = por %p1934_p10, %p1933_p9 }
 0x18a   : > { %p1931_p8 = pneg %p1930_p7 }
 0x18c   : > { %p1936_p12 = pnand %p1935_p11, %p1931_p8 }
 0x18e   : > { %1939 = shalt.err (!%p1936_p12)
}
 0x18f   : > { %1862 = dma.vmem_to_hbm [thread:$0]  (%p2046_p5), %s1677_s25, 384, %s2185_s28, %s1662_s16  }
 0x190 PF: > { %p1868_p13 = scmp.ge.s32.totalorder %s1974_s15, 2  ;;  %s1688_s17 = sand.u32 1, %s1962_s12  }
 0x191   : > { %s1689_s19 = scalar_lea.sflag [#allocation3], %s1688_s17 }
 0x192   : > { %p1865_p0 = pnand %p1868_p13, %p2050_p6 }
 0x194   : > { %p1866_p1 = pneg %p1865_p0 }
 0x196   : > { %1957 = dma.done.wait (%p1866_p1), %s1689_s19, 384  }
 0x197   : > { %1959 = vsyncadd (%p1866_p1), %s1689_s19, 4294966912  ;;  %p13_p2 = scmp.ge.s32.totalorder %s2033_s18, 4   ;;  %s2228_s12 = smov %s1966_s13 }
 0x198   : > { %s2229_s13 = smov %s1970_s14  ;;  %s2230_s14 = smov %s2044_s21 }
 0x199   : > { %s2231_s15 = smov %s2033_s18  ;;  %15 = sbr.rel (!%p13_p2) target bundleno = 3 (0x3), region = 75 }
 0x19e   :  { %1694 = vsyncpa [#allocation3], 1 }
 0x19f   :  { %1696 = vsyncpa [#allocation3 + $0x1], 1 }

</bundles_post_ra>
